<compile_context>
chip_gen: v5e
topology: v5e:2x2
jax: 0.10.0
libtpu: 0.0.40
codegen_flags: <defaults>
</compile_context>

<pallas_src>
import functools

import jax
import jax.numpy as jnp
from jax.experimental import pallas as pl
from jax.experimental.pallas import tpu as pltpu

_MIB = 1024 * 1024


# ----------------------------- kernels --------------------------------------


def _ffn_kernel_resident(x_ref, w1_ref, b1_ref, w2_ref, b2_ref, o_ref):
    # Weights resident in VMEM (constant index_map) -> DMA'd once per call.
    h = jnp.dot(x_ref[...], w1_ref[...], preferred_element_type=jnp.float32)
    h = jnp.maximum(h + b1_ref[...], 0.0)                       # bias + ReLU in f32
    y = jnp.dot(h.astype(w2_ref.dtype), w2_ref[...],
                preferred_element_type=jnp.float32)
    o_ref[...] = (y + b2_ref[...]).astype(o_ref.dtype)


def _ffn_kernel_tiled(x_ref, w1_ref, b1_ref, w2_ref, b2_ref, o_ref, acc_ref):
    # x_ref:  (bm, C)   token tile (block index constant over h -> no re-DMA)
    # w1_ref: (C, th)   slice of first weight
    # b1_ref: (1, th)   slice of first bias (f32)
    # w2_ref: (th, C)   slice of second weight
    # b2_ref: (1, C)    second bias (f32)
    # o_ref:  (bm, C)   output tile (same block across h -> written once)
    # acc_ref:(bm, C)   f32 accumulator scratch
    h_idx = pl.program_id(1)

    h = jnp.dot(x_ref[...], w1_ref[...], preferred_element_type=jnp.float32)
    h = jnp.maximum(h + b1_ref[...], 0.0)
    contrib = jnp.dot(h.astype(w2_ref.dtype), w2_ref[...],
                      preferred_element_type=jnp.float32)

    @pl.when(h_idx == 0)
    def _first():
        # Seed with b2: no zero-init pass, no separate bias add in the epilogue.
        acc_ref[...] = contrib + b2_ref[...]

    @pl.when(h_idx != 0)
    def _accumulate():
        acc_ref[...] += contrib

    @pl.when(h_idx == pl.num_programs(1) - 1)
    def _store():
        o_ref[...] = acc_ref[...].astype(o_ref.dtype)


# ------------------------- tiling / budget logic -----------------------------


def _round_up(x, m):
    return (x + m - 1) // m * m


def _vmem_limits():
    """(vmem_limit_bytes handed to Mosaic, budget for our own tile accounting)."""
    try:
        cap = int(pltpu.get_tpu_info().vmem_capacity_bytes)
    except Exception:
        cap = 64 * _MIB                      # conservative (v7x-sized) default
    limit = max(32 * _MIB, min(cap - 8 * _MIB, 112 * _MIB))
    budget = int(limit * 0.85)               # slack for compiler-internal scratch
    return limit, budget


def _tile_vmem_bytes(bm, th, C, x_it, w_it, o_it, tiled):
    # Inputs/outputs are double-buffered by the BlockSpec pipeline (x2).
    wts = 2 * 2 * C * th * w_it              # w1 + w2 slices
    bias = 2 * 2 * (th + C) * 4              # b1 + b2 (f32), tiny
    xio = 2 * bm * C * (x_it + o_it)         # x + out tiles
    acc = bm * C * 4 if tiled else 0         # f32 accumulator scratch
    hbuf = 2 * bm * th * 4                   # (bm, th) f32 intermediate + slack
    return wts + bias + xio + acc + hbuf


def _bm_candidates(block_m, M, mult):
    target = 1024 if block_m is None else max(mult, block_m)
    m_cap = _round_up(M, mult)
    cands, seen = [], set()
    b = target
    while b >= mult:
        c = _round_up(min(b, m_cap), mult)
        if c not in seen:
            seen.add(c)
            cands.append(c)
        b //= 2
    if mult not in seen:
        cands.append(mult)
    return cands


def _snap_to_divisor(H, th):
    t = th
    while t >= 128:
        if H % t == 0:
            return t
        t -= 128
    return th                                 # no 128-multiple divisor; H is padded


def _th_candidates(block_h, H):
    target = 2048 if block_h is None else max(128, block_h)
    cap = max(128, min((target // 128) * 128, _round_up(H, 128)))
    cands, seen = [], set()
    t = cap
    while t >= 128:
        c = _snap_to_divisor(H, t)
        if c not in seen:
            seen.add(c)
            cands.append(c)
        t //= 2
    if 128 not in seen:
        cands.append(128)
    return cands


def _select_tiling(M, C, H, x_it, w_it, o_it, budget, block_m, block_h, mult):
    """Returns (bm, th, tiled)."""
    bm_cands = _bm_candidates(block_m, M, mult)
    force_tiled = block_h is not None and block_h < H

    if not force_tiled:
        # Weight-resident fast path: weights DMA'd once, stay in VMEM.
        for bm in bm_cands:
            if _tile_vmem_bytes(bm, H, C, x_it, w_it, o_it, tiled=False) <= budget:
                # Give v7x's second TensorCore work on small M (>= 2 token tiles).
                if M > mult and _round_up(M, bm) // bm < 2:
                    bm = min(bm, _round_up((M + 1) // 2, mult))
                return bm, H, False

    th_cands = _th_candidates(block_h, H)
    # Prefer keeping th >= 512 (fewer acc RMW passes) while maximizing bm
    # (bm is the biggest lever: weights are re-streamed once per token tile).
    th_pref = [t for t in th_cands if t >= min(512, th_cands[0])]
    for ths in (th_pref, th_cands):
        for bm in bm_cands:
            for th in ths:
                if _tile_vmem_bytes(bm, th, C, x_it, w_it, o_it, tiled=True) <= budget:
                    return bm, th, True
    return bm_cands[-1], 128, True             # last resort (tiny tiles)


# ------------------------------- wrapper -------------------------------------


@functools.partial(jax.jit, static_argnames=("block_m", "block_h"))
def feed_forward(x, w1, b1, w2, b2, *, block_m=None, block_h=None):
    """x: (B, T, C) -> (B, T, C).  w1: (C, H), b1: (H,), w2: (H, C), b2: (C,)."""
    B, T, C = x.shape
    H = w1.shape[1]              # 4 * C
    M = B * T
    out_dtype = x.dtype

    vmem_limit, budget = _vmem_limits()

    # Cast x to the weight dtype in the wrapper (halves x HBM/VMEM traffic for
    # bf16 weights; removes the per-h-step in-kernel cast).
    x2d = x.reshape(M, C).astype(w1.dtype)

    x_it = x2d.dtype.itemsize
    o_it = jnp.dtype(out_dtype).itemsize
    w_it = w1.dtype.itemsize
    mult = max(8, 32 // min(x_it, o_it))       # sublane multiple (8 f32, 16 bf16)

    bm, th, tiled = _select_tiling(M, C, H, x_it, w_it, o_it, budget,
                                   block_m, block_h, mult)

    M_pad = _round_up(M, bm)
    if M_pad != M:
        x2d = jnp.pad(x2d, ((0, M_pad - M), (0, 0)))

    # Zero-pad the hidden dim to a multiple of the tile: zero w1 columns /
    # zero w2 rows contribute exactly 0 through ReLU and the second matmul.
    H_pad = _round_up(H, th)
    w1_p, w2_p, b1_p = w1, w2, b1
    if H_pad != H:
        w1_p = jnp.pad(w1, ((0, 0), (0, H_pad - H)))
        w2_p = jnp.pad(w2, ((0, H_pad - H), (0, 0)))
        b1_p = jnp.pad(b1, ((0, H_pad - H),))

    # Biases kept in f32 so bias-add / ReLU stay on the f32 VPU path (v5e safe).
    b1_2d = b1_p.reshape(1, H_pad).astype(jnp.float32)
    b2_2d = b2.reshape(1, C).astype(jnp.float32)

    n_m = M_pad // bm
    n_h = H_pad // th
    w_reps = n_m if tiled else 1               # weight HBM re-streaming factor
    cost = pl.CostEstimate(
        flops=int(4 * M_pad * C * H_pad),      # two matmuls: 2*M*C*H each
        transcendentals=0,
        bytes_accessed=int(
            x2d.size * x_it
            + w_reps * (w1_p.size * w_it + w2_p.size * w2_p.dtype.itemsize)
            + b1_2d.size * 4 + b2_2d.size * 4
            + M_pad * C * o_it),
    )

    if not tiled:
        grid_spec = pltpu.PrefetchScalarGridSpec(
            num_scalar_prefetch=0,
            grid=(n_m,),
            in_specs=[
                pl.BlockSpec((bm, C), lambda i: (i, 0)),       # x tile
                pl.BlockSpec((C, H_pad), lambda i: (0, 0)),    # w1 (resident)
                pl.BlockSpec((1, H_pad), lambda i: (0, 0)),    # b1
                pl.BlockSpec((H_pad, C), lambda i: (0, 0)),    # w2 (resident)
                pl.BlockSpec((1, C), lambda i: (0, 0)),        # b2
            ],
            out_specs=pl.BlockSpec((bm, C), lambda i: (i, 0)),
        )
        kernel = _ffn_kernel_resident
        dims = ("parallel",)
    else:
        grid_spec = pltpu.PrefetchScalarGridSpec(
            num_scalar_prefetch=0,
            grid=(n_m, n_h),                   # (token tiles, hidden tiles)
            in_specs=[
                pl.BlockSpec((bm, C), lambda i, h: (i, 0)),    # x tile
                pl.BlockSpec((C, th), lambda i, h: (0, h)),    # w1 slice
                pl.BlockSpec((1, th), lambda i, h: (0, h)),    # b1 slice
                pl.BlockSpec((th, C), lambda i, h: (h, 0)),    # w2 slice
                pl.BlockSpec((1, C), lambda i, h: (0, 0)),     # b2
            ],
            out_specs=pl.BlockSpec((bm, C), lambda i, h: (i, 0)),
            scratch_shapes=[pltpu.VMEM((bm, C), jnp.float32)],
        )
        kernel = _ffn_kernel_tiled
        dims = ("parallel", "arbitrary")

    out2d = pl.pallas_call(
        kernel,
        out_shape=jax.ShapeDtypeStruct((M_pad, C), out_dtype),
        grid_spec=grid_spec,
        compiler_params=pltpu.CompilerParams(
            dimension_semantics=dims,
            vmem_limit_bytes=int(vmem_limit),
        ),
        cost_estimate=cost,
    )(x2d, w1_p, b1_2d, w2_p, b2_2d)

    if M_pad != M:
        out2d = out2d[:M]
    return out2d.reshape(B, T, C)


# ------------------------------ test harness ---------------------------------


def _init_params(key, n_embed, dtype=jnp.float32):
    """Deterministic init mimicking nn.Linear's uniform(-1/sqrt(fan_in), ...)."""
    hidden = 4 * n_embed
    k1, k2, k3, k4 = jax.random.split(key, 4)
    bound1 = 1.0 / jnp.sqrt(n_embed)
    bound2 = 1.0 / jnp.sqrt(hidden)
    # stored as (in, out) so the kernel does x @ W (== x @ W_pt.T)
    w1 = jax.random.uniform(k1, (n_embed, hidden), dtype, -bound1, bound1)
    b1 = jax.random.uniform(k2, (hidden,), dtype, -bound1, bound1)
    w2 = jax.random.uniform(k3, (hidden, n_embed), dtype, -bound2, bound2)
    b2 = jax.random.uniform(k4, (n_embed,), dtype, -bound2, bound2)
    return w1, b1, w2, b2


def _ref_ffn(x, w1, b1, w2, b2):
    B, T, C = x.shape
    y = jnp.maximum(x.reshape(-1, C) @ w1 + b1, 0.0) @ w2 + b2
    return y.reshape(B, T, C)


if __name__ == "__main__":
    key = jax.random.PRNGKey(0)
    kx, kp, kx2, kp2, kx3, kp3 = jax.random.split(key, 6)

    # --- test 1: small toy config, f32, weight-resident path ----------------
    B, T, n_embed = 2, 8, 32                 # tokens = 16, hidden = 128
    x = jax.random.normal(kx, (B, T, n_embed), dtype=jnp.float32)
    w1, b1, w2, b2 = _init_params(kp, n_embed)

    out = jax.block_until_ready(feed_forward(x, w1, b1, w2, b2))
    ref = _ref_ffn(x, w1, b1, w2, b2)
    assert out.shape == (B, T, n_embed)
    assert jnp.allclose(out, ref, atol=1e-5, rtol=1e-5)

    # --- test 2: bf16 weights (MXU fast path), f32 accumulation -------------
    w1b, w2b = w1.astype(jnp.bfloat16), w2.astype(jnp.bfloat16)
    out_bf = jax.block_until_ready(feed_forward(x, w1b, b1, w2b, b2))
    ref_bf = _ref_ffn(x.astype(jnp.bfloat16).astype(jnp.float32),
                      w1b.astype(jnp.float32), b1,
                      w2b.astype(jnp.float32), b2)
    assert jnp.allclose(out_bf, ref_bf, atol=5e-2, rtol=5e-2)

    # --- test 3: forces token padding + H-axis tiling/accumulator path ------
    B2, T2, n_embed2 = 2, 100, 256           # M = 200 (padded), H = 1024
    x2 = jax.random.normal(kx2, (B2, T2, n_embed2), dtype=jnp.float32)
    p2 = _init_params(kp2, n_embed2)
    out2 = jax.block_until_ready(
        feed_forward(x2, *p2, block_m=128, block_h=512))   # block_h < H -> tiled
    ref2 = _ref_ffn(x2, *p2)
    assert out2.shape == (B2, T2, n_embed2)
    assert jnp.allclose(out2, ref2, atol=1e-3, rtol=1e-3)

    # --- test 4: exercises hidden-dim zero padding (H = 96 -> 128) ----------
    B3, T3, n_embed3 = 2, 8, 24              # H = 96, not a multiple of 128
    x3 = jax.random.normal(kx3, (B3, T3, n_embed3), dtype=jnp.float32)
    p3 = _init_params(kp3, n_embed3)
    out3 = jax.block_until_ready(feed_forward(x3, *p3, block_h=64))  # force tiled
    ref3 = _ref_ffn(x3, *p3)
    assert out3.shape == (B3, T3, n_embed3)
    assert jnp.allclose(out3, ref3, atol=1e-5, rtol=1e-5)

    print("KERNEL_OK")
</pallas_src>

<mosaic_0001>
module attributes {stable_mosaic.version = 11 : i64} {
  func.func @_ffn_kernel_resident(%arg0: i32, %arg1: memref<8x32xf32, #tpu.memory_space<vmem>>, %arg2: memref<32x128xf32, #tpu.memory_space<vmem>>, %arg3: memref<1x128xf32, #tpu.memory_space<vmem>>, %arg4: memref<128x32xf32, #tpu.memory_space<vmem>>, %arg5: memref<1x32xf32, #tpu.memory_space<vmem>>, %arg6: memref<8x32xf32, #tpu.memory_space<vmem>>) attributes {dimension_semantics = [#tpu.dimension_semantics<parallel>], iteration_bounds = array<i64: 2>, scalar_prefetch = 0 : i64, scratch_operands = 0 : i64, tpu.core_type = #tpu.core_type<tc>, window_params = [{transform_indices = @transform_0, window_bounds = array<i64: 8, 32>}, {pipeline_mode = #tpu.pipeline_mode<synchronous>, transform_indices = @transform_1, window_bounds = array<i64: 32, 128>}, {pipeline_mode = #tpu.pipeline_mode<synchronous>, transform_indices = @transform_2, window_bounds = array<i64: 1, 128>}, {pipeline_mode = #tpu.pipeline_mode<synchronous>, transform_indices = @transform_3, window_bounds = array<i64: 128, 32>}, {pipeline_mode = #tpu.pipeline_mode<synchronous>, transform_indices = @transform_4, window_bounds = array<i64: 1, 32>}, {transform_indices = @transform_5, window_bounds = array<i64: 8, 32>}]} {
    %c0 = arith.constant 0 : index
    %c0_0 = arith.constant 0 : index
    %0 = vector.load %arg1[%c0, %c0_0] : memref<8x32xf32, #tpu.memory_space<vmem>>, vector<8x32xf32>
    %c0_1 = arith.constant 0 : index
    %c0_2 = arith.constant 0 : index
    %1 = vector.load %arg2[%c0_1, %c0_2] : memref<32x128xf32, #tpu.memory_space<vmem>>, vector<32x128xf32>
    %cst = arith.constant dense<0.000000e+00> : vector<8x128xf32>
    %2 = tpu.matmul %0, %1, %cst {dimension_numbers = #tpu.dot_dimension_numbers<[1], [0], [0], [1], [0, 0, 1, 1], [], []>} : vector<8x32xf32>, vector<32x128xf32>, vector<8x128xf32> -> vector<8x128xf32>
    %c0_3 = arith.constant 0 : index
    %c0_4 = arith.constant 0 : index
    %3 = vector.load %arg3[%c0_3, %c0_4] : memref<1x128xf32, #tpu.memory_space<vmem>>, vector<1x128xf32>
    %4 = vector.broadcast %3 : vector<1x128xf32> to vector<8x128xf32>
    %5 = arith.addf %2, %4 : vector<8x128xf32>
    %cst_5 = arith.constant 0.000000e+00 : f32
    %6 = vector.broadcast %cst_5 : f32 to vector<8x128xf32>
    %7 = arith.maximumf %5, %6 : vector<8x128xf32>
    %c0_6 = arith.constant 0 : index
    %c0_7 = arith.constant 0 : index
    %8 = vector.load %arg4[%c0_6, %c0_7] : memref<128x32xf32, #tpu.memory_space<vmem>>, vector<128x32xf32>
    %cst_8 = arith.constant dense<0.000000e+00> : vector<8x32xf32>
    %9 = tpu.matmul %7, %8, %cst_8 {dimension_numbers = #tpu.dot_dimension_numbers<[1], [0], [0], [1], [0, 0, 1, 1], [], []>} : vector<8x128xf32>, vector<128x32xf32>, vector<8x32xf32> -> vector<8x32xf32>
    %c0_9 = arith.constant 0 : index
    %c0_10 = arith.constant 0 : index
    %10 = vector.load %arg5[%c0_9, %c0_10] : memref<1x32xf32, #tpu.memory_space<vmem>>, vector<1x32xf32>
    %11 = vector.broadcast %10 : vector<1x32xf32> to vector<8x32xf32>
    %12 = arith.addf %9, %11 : vector<8x32xf32>
    %c0_11 = arith.constant 0 : index
    %c0_12 = arith.constant 0 : index
    %13 = vector.load %arg6[%c0_11, %c0_12] : memref<8x32xf32, #tpu.memory_space<vmem>>, vector<8x32xf32>
    tpu.vector_store %arg6[%c0_11, %c0_12], %12 {strides = array<i32>} : memref<8x32xf32, #tpu.memory_space<vmem>>, vector<8x32xf32>,
    return
  }
  func.func @transform_0(%arg0: i32) -> (i32, i32) {
    %c0_i32 = arith.constant 0 : i32
    %c0_i32_0 = arith.constant 0 : i32
    return %arg0, %c0_i32 : i32, i32
  }
  func.func @transform_1(%arg0: i32) -> (i32, i32) {
    %c0_i32 = arith.constant 0 : i32
    %c0_i32_0 = arith.constant 0 : i32
    %c0_i32_1 = arith.constant 0 : i32
    return %c0_i32, %c0_i32_0 : i32, i32
  }
  func.func @transform_2(%arg0: i32) -> (i32, i32) {
    %c0_i32 = arith.constant 0 : i32
    %c0_i32_0 = arith.constant 0 : i32
    %c0_i32_1 = arith.constant 0 : i32
    return %c0_i32, %c0_i32_0 : i32, i32
  }
  func.func @transform_3(%arg0: i32) -> (i32, i32) {
    %c0_i32 = arith.constant 0 : i32
    %c0_i32_0 = arith.constant 0 : i32
    %c0_i32_1 = arith.constant 0 : i32
    return %c0_i32, %c0_i32_0 : i32, i32
  }
  func.func @transform_4(%arg0: i32) -> (i32, i32) {
    %c0_i32 = arith.constant 0 : i32
    %c0_i32_0 = arith.constant 0 : i32
    %c0_i32_1 = arith.constant 0 : i32
    return %c0_i32, %c0_i32_0 : i32, i32
  }
  func.func @transform_5(%arg0: i32) -> (i32, i32) {
    %c0_i32 = arith.constant 0 : i32
    %c0_i32_0 = arith.constant 0 : i32
    return %arg0, %c0_i32 : i32, i32
  }
}

</mosaic_0001>

<bundles_post_ra>
// kernel: feed_forward.1
= control target key start
LH: loop header
LB: loop body
LE: loop exit
PB: predicated region body
PF: predicated region fallthrough
CT: control target
= control target key end

     0   :  { %10 = vsyncpa [#allocation3], 0  ;;  %s669_s0 = inlined_call_operand.vmem [shape: f32[16,32], index: 0, kind: input, shape index: {}]   ;;  %s670_s1 = inlined_call_operand.vmem [shape: f32[32,128], index: 1, kind: input, shape index: {}]   ;;  %s671_s2 = inlined_call_operand.vmem [shape: f32[1,128], index: 2, kind: input, shape index: {}]   ;;  %s672_s3 = inlined_call_operand.vmem [shape: f32[128,32], index: 3, kind: input, shape index: {}]   ;;  %s673_s4 = inlined_call_operand.vmem [shape: f32[1,32], index: 4, kind: input, shape index: {}]   ;;  %s674_s5 = inlined_call_operand.hbm [shape: f32[16,32], index: 5, kind: output, shape index: {}]  }
   0x1   :  { %12 = vsyncpa [#allocation3 + $0x1], 0  ;;  %s516_s18 = smov 0   ;;  %s518_s19 = smov 0  }
   0x2   :  { %s520_s20 = smov 0   ;;  %s522_s21 = smov 0  }
   0x3 LB: > { %s537_s22 = sadd.s32 4294967295, %s484_s21   ;;  %s370_s23 = sadd.s32 4294967294, %s484_s21   ;;  %s484_s21 = sphi %s522_s21, %s680_s21   ;;  %s480_s20 = sphi %s520_s20, %s679_s20   ;;  %s476_s19 = sphi %s518_s19, %s678_s19   ;;  %s472_s18 = sphi %s516_s18, %s677_s18  }
   0x4   : > { %s541_s24 = sadd.s32 1, %s484_s21   ;;  %s135_s25 = sadd.s32 1, %s480_s20 }
   0x5   : > { %s132_s26 = ssub.s32 %s484_s21, %s541_s24  ;;  %p145_p0 = scmp.ne.s32.totalorder %s480_s20, %s476_s19 }
   0x6   : > { %p133_p1 = scmp.eq.s32.totalorder %s132_s26, 0  ;;  %p146_p2 = scmp.eq.s32.totalorder %s537_s22, 1 }
   0x7   : > { %p151_p3 = scmp.ne.s32.totalorder %s476_s19, %s472_s18  ;;  %p152_p4 = scmp.eq.s32.totalorder %s370_s23, 1 }
   0x8   : > { %s552_s27 = scalar_select %p133_p1, %s480_s20, %s135_s25  }
   0x9   : > { %p554_p5 = por %p146_p2, %p145_p0  ;;  %p558_p6 = por %p152_p4, %p151_p3 }
   0xa   : > { %p373_p7 = scmp.ge.s32.totalorder %s484_s21, 1  ;;  %p189_p8 = scmp.lt.s32.totalorder %s484_s21, 3 }
   0xc   : > { %p190_p9 = pnand %p373_p7, %p189_p8 }
   0xd   : > { %p216_p10 = scmp.lt.s32.totalorder (!%p190_p9), %s537_s22, 1  ;;  %s378_s6 = sshll.u32 (!%p190_p9), %s537_s22, 3 }
   0xe   : > { %193 = sbr.rel (%p190_p9) target bundleno = 288 (0x120), region = 40  ;;  %s306_s9 = scalar_lea.hbm (!%p190_p9), %s674_s5, %s378_s6 }
   0xf   : > { %s310_s14 = sshll.u32 (!%p190_p9), %s306_s9, 4  ;;  %s442_s25 = scalar_lea.hbm (!%p190_p9), %s674_s5, 16  ;;  %s311_s14 = int_to_ptr.hbm [resolvable:$true] %s310_s14 }
  0x13   : > { %v224_v0 = vld [vmem:[%s670_s1 + $0x18] sm:$0xff]  ;;  %v223_v1 = vld [vmem:[%s670_s1 + $0x10] sm:$0xff]  ;;  %v222_v4 = vld [vmem:[%s670_s1 + $0x8] sm:$0xff]  ;;  %s217_s15 = scalar_select %p216_p10, %s537_s22, 1  ;;  %vm229_vm0 = vcmask 261120  }
  0x14   : > { %245 = vmatpush.msra.mxu0 %v224_v0  ;;  %v269_v2 = vld [vmem:[%s672_s3 + $0x78] sm:$0xff]  ;;  %v268_v3 = vld [vmem:[%s672_s3 + $0x70] sm:$0xff]  ;;  %v267_v5 = vld [vmem:[%s672_s3 + $0x68] sm:$0xff]  ;;  %s436_s22 = sshra.s32 %s311_s14, 4  ;;  %s437_s22 = int_to_ptr.hbm [resolvable:$true] %s436_s22 }
  0x15   : > { %274 = vmatpush.msra.mxu1 %v269_v2  ;;  %v221_v6 = vld [vmem:[%s670_s1] sm:$0xff]  ;;  %s375_s26 = sshll.u32 %s217_s15, 3  ;;  %v265_v9 = vld [vmem:[%s672_s3 + $0x58] sm:$0xff]  ;;  %v264_v10 = vld [vmem:[%s672_s3 + $0x50] sm:$0xff]  ;;  %s438_s16 = scalar_lea.hbm %s437_s22, 8 }
  0x16   : > { %246 = vmatpush.msra.mxu0 %v223_v1  ;;  %s219_s7 = scalar_lea.vmem %s669_s0, %s375_s26  ;;  %v266_v7 = vld [vmem:[%s672_s3 + $0x60] sm:$0xff]  ;;  %v263_v11 = vld [vmem:[%s672_s3 + $0x48] sm:$0xff]  ;;  %v261_v13 = vld [vmem:[%s672_s3 + $0x38] sm:$0xff]  ;;  %s213_s26 = sand.u32 1, %s476_s19  }
  0x17   : > { %275 = vmatpush.msra.mxu1 %v268_v3  ;;  %v220_v8 = vld [vmem:[%s219_s7] sm:$0xff]  ;;  %v260_v14 = vld [vmem:[%s672_s3 + $0x30] sm:$0xff]  ;;  %v259_v15 = vld [vmem:[%s672_s3 + $0x28] sm:$0xff]  ;;  %s374_s30 = sshll.u32 %s213_s26, 3  ;;  %s296_s15 = scalar_lea.sflag [#allocation3], %s213_s26 }
  0x18   : > { %247 = vmatpush.msra.mxu0 %v222_v4  ;;  %v262_v12 = vld [vmem:[%s672_s3 + $0x40] sm:$0xff]  ;;  %v257_v17 = vld [vmem:[%s672_s3 + $0x18] sm:$0xff]  ;;  %v256_v18 = vld [vmem:[%s672_s3 + $0x10] sm:$0xff]  ;;  %s215_s12 = scalar_lea.vmem [#allocation2], %s374_s30  ;;  %p439_p11 = scmp.ne.s32.totalorder %s437_s22, %s438_s16 }
  0x19   : > { %276 = vmatpush.msra.mxu1 %v267_v5  ;;  %v258_v16 = vld [vmem:[%s672_s3 + $0x20] sm:$0xff]  ;;  %v255_v19 = vld [vmem:[%s672_s3 + $0x8] sm:$0xff]  ;;  %s308_s13 = sshll.u32 %s215_s12, 4  ;;  %p443_p0 = scmp.lt.s32.totalorder %s437_s22, %s674_s5  ;;  %s309_s13 = int_to_ptr.vmem [resolvable:$true] %s308_s13 }
  0x1a   : > { %248 = vmatpush.msra.mxu0 %v221_v6  ;;  %v254_v20 = vld [vmem:[%s672_s3] sm:$0xff]  ;;  %p440_p12 = pnand %p439_p11, %p554_p5  ;;  %p444_p1 = scmp.lt.s32.totalorder %s442_s25, %s438_s16 }
  0x1b   : > { %376 = vmatmul.msk.f32.vlgmr.msra.gmra.mxu0 %vm229_vm0, %v220_v8  ;;  %277 = vmatpush.msra.mxu1 %v266_v7  ;;  %v420_v21 = vld [vmem:[%s671_s2] ss:$0 sm:$0xff] }
  0x1c   : > { %v421_v25 = vld [vmem:[%s673_s4] ss:$0 sm:$0xff]  ;;  %p441_p13 = pneg %p440_p12  ;;  %p445_p2 = por %p444_p1, %p443_p0 }
  0x1d   : > { %278 = vmatpush.msra.mxu1 %v265_v9 }
  0x1e   : > { %p446_p3 = pnand %p445_p2, %p441_p13 }
  0x1f   : > { %279 = vmatpush.msra.mxu1 %v264_v10 }
  0x21   : > { %280 = vmatpush.msra.mxu1 %v263_v11 }
  0x23   : > { %281 = vmatpush.msra.mxu1 %v262_v12 }
  0x25   : > { %282 = vmatpush.msra.mxu1 %v261_v13 }
  0x27   : > { %283 = vmatpush.msra.mxu1 %v260_v14 }
  0x29   : > { %284 = vmatpush.msra.mxu1 %v259_v15 }
  0x2b   : > { %285 = vmatpush.msra.mxu1 %v258_v16 }
  0x2d   : > { %286 = vmatpush.msra.mxu1 %v257_v17 }
  0x2f   : > { %287 = vmatpush.msra.mxu1 %v256_v18 }
  0x31   : > { %288 = vmatpush.msra.mxu1 %v255_v19 }
  0x33   : > { %289 = vmatpush.msra.mxu1 %v254_v20 }
  0x98   : > { %v250_v22 = vpop.f32.mrf.mxu0 }
  0x99   : > { %v251_v23 = vadd.f32 %v420_v21, %v250_v22 }
  0x9b   : > { %v253_v24 = vmax.f32 %v251_v23, 0.0 }
  0x9d   : > { %290 = vmatmul.f32.vlgmr.msra.gmra.mxu1 %v253_v24 }
 0x11a   : > { %v291_v26 = vpop.f32.mrf.mxu1 }
 0x11b   : > { %v292_v27 = vadd.f32 %v421_v25, %v291_v26 }
 0x11d   : > { %294 = vst.msk [vmem:[%s215_s12] sm:$0xff] %vm229_vm0, %v292_v27 }
 0x11e   : > { %449 = shalt.err (!%p446_p3)
}
 0x11f   : > { %381 = dma.vmem_to_hbm [thread:$0]  (%p554_p5), %s309_s13, 128, %s311_s14, %s296_s15  }
 0x120 PF: > { %p387_p4 = scmp.ge.s32.totalorder %s484_s21, 2  ;;  %s322_s26 = sand.u32 1, %s472_s18  }
 0x121   : > { %s323_s7 = scalar_lea.sflag [#allocation3], %s322_s26 }
 0x122   : > { %p384_p7 = pnand %p387_p4, %p558_p6 }
 0x124   : > { %p385_p8 = pneg %p384_p7 }
 0x126   : > { %467 = dma.done.wait (%p385_p8), %s323_s7, 128  }
 0x127   : > { %469 = vsyncadd (%p385_p8), %s323_s7, 4294967168  ;;  %p15_p9 = scmp.ge.s32.totalorder %s541_s24, 4   ;;  %s677_s18 = smov %s476_s19 }
 0x128   : > { %s678_s19 = smov %s480_s20  ;;  %s679_s20 = smov %s552_s27 }
 0x129   : > { %s680_s21 = smov %s541_s24  ;;  %17 = sbr.rel (!%p15_p9) target bundleno = 3 (0x3), region = 75 }
 0x12e   :  { %329 = vsyncpa [#allocation3], 1 }
 0x12f   :  { %331 = vsyncpa [#allocation3 + $0x1], 1 }

</bundles_post_ra>
